<compile_context>
chip_gen: v7x
topology: tpu7x:2x2x1
jax: 0.10.0
libtpu: 0.0.40
codegen_flags: <defaults>
</compile_context>

<pallas_src>
import functools

import jax
import jax.numpy as jnp
from jax.experimental import pallas as pl
from jax.experimental.pallas import tpu as pltpu


def _channel_attention_kernel(x_ref, w1t_ref, b1_ref, w2t_ref, b2_ref,
                              y_ref, att_ref, *, hw_valid, hw_pad, tb):
    f32 = jnp.float32

    # ---- Spatial pooling: promote per-vreg inside the reductions (no stored
    # f32 copy of the tile).  x block: (TB, C, HWp) in the input dtype.
    s = jnp.sum(x_ref[...].astype(f32), axis=-1)                  # (TB, C)
    avg = s * f32(1.0 / hw_valid)

    if hw_pad != hw_valid:
        # Padded lanes hold zeros (correct for the sum); mask them for max.
        lane = jax.lax.broadcasted_iota(jnp.int32, (x_ref.shape[1], hw_pad), 1)
        xm = jnp.where(lane < hw_valid, x_ref[...].astype(f32), -jnp.inf)
        mx = jnp.max(xm, axis=-1)                                  # (TB, C)
    else:
        mx = jnp.max(x_ref[...], axis=-1).astype(f32)              # (TB, C)

    # ---- Shared 2-layer MLP, both branches fused into one matmul pair.
    # Weights are pre-transposed in the wrapper: w1t (C, Ch), w2t (Ch, C).
    v = jnp.concatenate([avg, mx], axis=0)                         # (2*TB, C)
    w1t = w1t_ref[...].astype(f32)
    w2t = w2t_ref[...].astype(f32)
    b1 = b1_ref[...].astype(f32)                                   # (1, Ch)
    b2 = b2_ref[...].astype(f32)                                   # (1, C)

    h = jnp.maximum(jnp.dot(v, w1t, preferred_element_type=f32) + b1, 0.0)
    o = jax.nn.sigmoid(jnp.dot(h, w2t, preferred_element_type=f32) + b2)
    att = o[:tb] + o[tb:]                                          # (TB, C)

    # Lane-dense attention store: block (TB, 1, C), C on the lane axis.
    att_ref[...] = att[:, None, :]

    # ---- Broadcast scale in the input dtype (bf16 stays bf16 on v6e/v7x;
    # for f32 inputs this is identical to the f32 path).
    y_ref[...] = x_ref[...] * att.astype(y_ref.dtype)[:, :, None]


def _pick_tb(batch, per_sample_bytes, target_bytes=2 << 20):
    """Batch-block size: ~target_bytes input tile, >=2 grid steps, divides B."""
    tb = max(1, min(batch, target_bytes // max(per_sample_bytes, 1)))
    if batch >= 2:
        tb = max(1, min(tb, batch // 2))   # keep both v7x TensorCores busy
    while batch % tb:
        tb -= 1
    return tb


def channel_attention(x, w1, b1, w2, b2):
    """x: (B, C, H, W) NCHW.  w1: (C//r, C), b1: (C//r,), w2: (C, C//r),
    b2: (C,) (PyTorch nn.Linear layouts).  Returns (y, attention) with
    attention shaped (B, C, 1, 1), matching self.last_attention."""
    B, C, H, W = x.shape
    HW = H * W
    LANES = 128
    HWp = ((HW + LANES - 1) // LANES) * LANES

    x3 = x.reshape(B, C, HW)                  # contiguous reshape, free
    if HWp != HW:
        # One-time pad so the dominant x load / y store are full-lane vld/vst.
        x3 = jnp.pad(x3, ((0, 0), (0, 0), (0, HWp - HW)))

    # Tiny weights: pre-transpose once so the kernel runs row-form matmuls.
    w1t = w1.T                                 # (C, Ch)
    w2t = w2.T                                 # (Ch, C)
    b1r = b1.reshape(1, -1)                    # (1, Ch)
    b2r = b2.reshape(1, -1)                    # (1, C)

    itemsize = jnp.dtype(x.dtype).itemsize
    per_sample_bytes = C * HWp * itemsize
    TB = _pick_tb(B, per_sample_bytes)
    steps = B // TB
    tile_bytes = TB * per_sample_bytes

    # VMEM budget: double-buffered (in + out) tiles + weights + slack.
    vmem_limit = int(min(max(4 * tile_bytes + (4 << 20), 16 << 20), 64 << 20))
    # TODO(synk): for very large C*HW (single-sample tile > ~12 MiB) add an
    # HW-chunked two-phase (pool-then-scale) fallback so v7x (64 MiB VMEM)
    # keeps double-buffered pipelining.

    kernel = functools.partial(_channel_attention_kernel,
                               hw_valid=HW, hw_pad=HWp, tb=TB)

    y3, att3 = pl.pallas_call(
        kernel,
        out_shape=(jax.ShapeDtypeStruct((B, C, HWp), x.dtype),
                   jax.ShapeDtypeStruct((B, 1, C), jnp.float32)),
        grid=(steps,),
        in_specs=[
            pl.BlockSpec((TB, C, HWp), lambda i: (i, 0, 0)),   # x tile
            pl.BlockSpec(w1t.shape, lambda i: (0, 0)),          # resident weights
            pl.BlockSpec(b1r.shape, lambda i: (0, 0)),
            pl.BlockSpec(w2t.shape, lambda i: (0, 0)),
            pl.BlockSpec(b2r.shape, lambda i: (0, 0)),
        ],
        out_specs=(
            pl.BlockSpec((TB, C, HWp), lambda i: (i, 0, 0)),    # y tile
            pl.BlockSpec((TB, 1, C), lambda i: (i, 0, 0)),      # lane-dense att
        ),
        compiler_params=pltpu.CompilerParams(
            dimension_semantics=("parallel",),
            vmem_limit_bytes=vmem_limit),
    )(x3, w1t, b1r, w2t, b2r)

    if HWp != HW:
        y3 = y3[:, :, :HW]
    y = y3.reshape(B, C, H, W)
    att = att3.reshape(B, C, 1, 1)             # matches self.last_attention
    return y, att


def _reference(x, w1, b1, w2, b2):
    """Pure-JAX reference of ChannelAttention.forward."""
    B, C, H, W = x.shape
    avg = jnp.mean(x, axis=(2, 3))                                 # (B, C)
    mx = jnp.max(x, axis=(2, 3))                                   # (B, C)

    def fc(v):
        h = jnp.maximum(v @ w1.T + b1.reshape(1, -1), 0.0)
        return jax.nn.sigmoid(h @ w2.T + b2.reshape(1, -1))

    att = (fc(avg) + fc(mx)).reshape(B, C, 1, 1)
    return x * att, att


if __name__ == "__main__":
    def run_case(B, C, H, W, reduction):
        Ch = max(C // reduction, 1)
        key = jax.random.PRNGKey(0)
        kx, k1, k2, k3, k4 = jax.random.split(key, 5)
        x = jax.random.normal(kx, (B, C, H, W), dtype=jnp.float32)
        w1 = 0.25 * jax.random.normal(k1, (Ch, C), dtype=jnp.float32)
        b1 = 0.25 * jax.random.normal(k2, (Ch,), dtype=jnp.float32)
        w2 = 0.25 * jax.random.normal(k3, (C, Ch), dtype=jnp.float32)
        b2 = 0.25 * jax.random.normal(k4, (C,), dtype=jnp.float32)

        y, att = channel_attention(x, w1, b1, w2, b2)
        y = jax.block_until_ready(y)
        att = jax.block_until_ready(att)

        y_ref, att_ref = _reference(x, w1, b1, w2, b2)
        assert y.shape == x.shape and y.dtype == x.dtype
        assert att.shape == (B, C, 1, 1)
        assert jnp.allclose(att, att_ref, atol=1e-5, rtol=1e-5), \
            float(jnp.max(jnp.abs(att - att_ref)))
        assert jnp.allclose(y, y_ref, atol=1e-5, rtol=1e-5), \
            float(jnp.max(jnp.abs(y - y_ref)))

    # Lane-aligned spatial size (HW = 256) and a ragged one (HW = 49 -> pad 128).
    run_case(2, 32, 16, 16, 16)
    run_case(2, 32, 7, 7, 16)
    print("KERNEL_OK")
</pallas_src>

<mosaic_0001>
module attributes {stable_mosaic.version = 11 : i64} {
  func.func @_channel_attention_kernel(%arg0: i32, %arg1: memref<1x32x256xf32, #tpu.memory_space<vmem>>, %arg2: memref<32x2xf32, #tpu.memory_space<vmem>>, %arg3: memref<1x2xf32, #tpu.memory_space<vmem>>, %arg4: memref<2x32xf32, #tpu.memory_space<vmem>>, %arg5: memref<1x32xf32, #tpu.memory_space<vmem>>, %arg6: memref<1x32x256xf32, #tpu.memory_space<vmem>>, %arg7: memref<1x1x32xf32, #tpu.memory_space<vmem>>) attributes {dimension_semantics = [#tpu.dimension_semantics<parallel>], iteration_bounds = array<i64: 2>, scalar_prefetch = 0 : i64, scratch_operands = 0 : i64, tpu.core_type = #tpu.core_type<tc>, window_params = [{transform_indices = @transform_0, window_bounds = array<i64: 1, 32, 256>}, {pipeline_mode = #tpu.pipeline_mode<synchronous>, transform_indices = @transform_1, window_bounds = array<i64: 32, 2>}, {pipeline_mode = #tpu.pipeline_mode<synchronous>, transform_indices = @transform_2, window_bounds = array<i64: 1, 2>}, {pipeline_mode = #tpu.pipeline_mode<synchronous>, transform_indices = @transform_3, window_bounds = array<i64: 2, 32>}, {pipeline_mode = #tpu.pipeline_mode<synchronous>, transform_indices = @transform_4, window_bounds = array<i64: 1, 32>}, {transform_indices = @transform_5, window_bounds = array<i64: 1, 32, 256>}, {transform_indices = @transform_6, window_bounds = array<i64: 1, 1, 32>}]} {
    %c0 = arith.constant 0 : index
    %c0_0 = arith.constant 0 : index
    %c0_1 = arith.constant 0 : index
    %0 = vector.load %arg1[%c0, %c0_0, %c0_1] : memref<1x32x256xf32, #tpu.memory_space<vmem>>, vector<1x32x256xf32>
    %cst = arith.constant dense<0.000000e+00> : vector<1x32xf32>
    %1 = vector.multi_reduction <add>, %0, %cst [2] : vector<1x32x256xf32> to vector<1x32xf32>
    %cst_2 = arith.constant 3.906250e-03 : f32
    %2 = vector.broadcast %cst_2 : f32 to vector<1x32xf32>
    %3 = arith.mulf %1, %2 : vector<1x32xf32>
    %c0_3 = arith.constant 0 : index
    %c0_4 = arith.constant 0 : index
    %c0_5 = arith.constant 0 : index
    %4 = vector.load %arg1[%c0_3, %c0_4, %c0_5] : memref<1x32x256xf32, #tpu.memory_space<vmem>>, vector<1x32x256xf32>
    %cst_6 = arith.constant dense<0xFF800000> : vector<1x32xf32>
    %5 = vector.multi_reduction <maximumf>, %4, %cst_6 [2] : vector<1x32x256xf32> to vector<1x32xf32>
    %6 = tpu.concatenate %3, %5 in 0 : vector<1x32xf32>, vector<1x32xf32> -> vector<2x32xf32>
    %c0_7 = arith.constant 0 : index
    %c0_8 = arith.constant 0 : index
    %7 = vector.load %arg2[%c0_7, %c0_8] : memref<32x2xf32, #tpu.memory_space<vmem>>, vector<32x2xf32>
    %c0_9 = arith.constant 0 : index
    %c0_10 = arith.constant 0 : index
    %8 = vector.load %arg4[%c0_9, %c0_10] : memref<2x32xf32, #tpu.memory_space<vmem>>, vector<2x32xf32>
    %c0_11 = arith.constant 0 : index
    %c0_12 = arith.constant 0 : index
    %9 = vector.load %arg3[%c0_11, %c0_12] : memref<1x2xf32, #tpu.memory_space<vmem>>, vector<1x2xf32>
    %c0_13 = arith.constant 0 : index
    %c0_14 = arith.constant 0 : index
    %10 = vector.load %arg5[%c0_13, %c0_14] : memref<1x32xf32, #tpu.memory_space<vmem>>, vector<1x32xf32>
    %cst_15 = arith.constant dense<0.000000e+00> : vector<2x2xf32>
    %11 = tpu.matmul %6, %7, %cst_15 {dimension_numbers = #tpu.dot_dimension_numbers<[1], [0], [0], [1], [0, 0, 1, 1], [], []>} : vector<2x32xf32>, vector<32x2xf32>, vector<2x2xf32> -> vector<2x2xf32>
    %12 = vector.broadcast %9 : vector<1x2xf32> to vector<2x2xf32>
    %13 = arith.addf %11, %12 : vector<2x2xf32>
    %cst_16 = arith.constant 0.000000e+00 : f32
    %14 = vector.broadcast %cst_16 : f32 to vector<2x2xf32>
    %15 = arith.maximumf %13, %14 : vector<2x2xf32>
    %cst_17 = arith.constant dense<0.000000e+00> : vector<2x32xf32>
    %16 = tpu.matmul %15, %8, %cst_17 {dimension_numbers = #tpu.dot_dimension_numbers<[1], [0], [0], [1], [0, 0, 1, 1], [], []>} : vector<2x2xf32>, vector<2x32xf32>, vector<2x32xf32> -> vector<2x32xf32>
    %17 = vector.broadcast %10 : vector<1x32xf32> to vector<2x32xf32>
    %18 = arith.addf %16, %17 : vector<2x32xf32>
    %19 = arith.negf %18 : vector<2x32xf32>
    %20 = math.exp %19 : vector<2x32xf32>
    %cst_18 = arith.constant 1.000000e+00 : f32
    %21 = vector.broadcast %cst_18 : f32 to vector<2x32xf32>
    %22 = arith.addf %21, %20 : vector<2x32xf32>
    %23 = arith.divf %21, %22 : vector<2x32xf32>
    %24 = vector.extract_strided_slice %23 {offsets = [0, 0], sizes = [1, 32], strides = [1, 1]} : vector<2x32xf32> to vector<1x32xf32>
    %25 = vector.extract_strided_slice %23 {offsets = [1, 0], sizes = [1, 32], strides = [1, 1]} : vector<2x32xf32> to vector<1x32xf32>
    %26 = arith.addf %24, %25 : vector<1x32xf32>
    %27 = vector.shape_cast %26 : vector<1x32xf32> to vector<1x1x32xf32>
    %c0_19 = arith.constant 0 : index
    %c0_20 = arith.constant 0 : index
    %c0_21 = arith.constant 0 : index
    %28 = vector.load %arg7[%c0_19, %c0_20, %c0_21] : memref<1x1x32xf32, #tpu.memory_space<vmem>>, vector<1x1x32xf32>
    tpu.vector_store %arg7[%c0_19, %c0_20, %c0_21], %27 {strides = array<i32>} : memref<1x1x32xf32, #tpu.memory_space<vmem>>, vector<1x1x32xf32>,
    %c0_22 = arith.constant 0 : index
    %c0_23 = arith.constant 0 : index
    %c0_24 = arith.constant 0 : index
    %29 = vector.load %arg1[%c0_22, %c0_23, %c0_24] : memref<1x32x256xf32, #tpu.memory_space<vmem>>, vector<1x32x256xf32>
    %30 = vector.shape_cast %26 : vector<1x32xf32> to vector<1x32x1xf32>
    %31 = vector.broadcast %30 : vector<1x32x1xf32> to vector<1x32x256xf32>
    %32 = arith.mulf %29, %31 : vector<1x32x256xf32>
    %c0_25 = arith.constant 0 : index
    %c0_26 = arith.constant 0 : index
    %c0_27 = arith.constant 0 : index
    %33 = vector.load %arg6[%c0_25, %c0_26, %c0_27] : memref<1x32x256xf32, #tpu.memory_space<vmem>>, vector<1x32x256xf32>
    tpu.vector_store %arg6[%c0_25, %c0_26, %c0_27], %32 {strides = array<i32>} : memref<1x32x256xf32, #tpu.memory_space<vmem>>, vector<1x32x256xf32>,
    return
  }
  func.func @transform_0(%arg0: i32) -> (i32, i32, i32) {
    %c0_i32 = arith.constant 0 : i32
    %c0_i32_0 = arith.constant 0 : i32
    %c0_i32_1 = arith.constant 0 : i32
    return %arg0, %c0_i32, %c0_i32_0 : i32, i32, i32
  }
  func.func @transform_1(%arg0: i32) -> (i32, i32) {
    %c0_i32 = arith.constant 0 : i32
    %c0_i32_0 = arith.constant 0 : i32
    %c0_i32_1 = arith.constant 0 : i32
    return %c0_i32, %c0_i32_0 : i32, i32
  }
  func.func @transform_2(%arg0: i32) -> (i32, i32) {
    %c0_i32 = arith.constant 0 : i32
    %c0_i32_0 = arith.constant 0 : i32
    %c0_i32_1 = arith.constant 0 : i32
    return %c0_i32, %c0_i32_0 : i32, i32
  }
  func.func @transform_3(%arg0: i32) -> (i32, i32) {
    %c0_i32 = arith.constant 0 : i32
    %c0_i32_0 = arith.constant 0 : i32
    %c0_i32_1 = arith.constant 0 : i32
    return %c0_i32, %c0_i32_0 : i32, i32
  }
  func.func @transform_4(%arg0: i32) -> (i32, i32) {
    %c0_i32 = arith.constant 0 : i32
    %c0_i32_0 = arith.constant 0 : i32
    %c0_i32_1 = arith.constant 0 : i32
    return %c0_i32, %c0_i32_0 : i32, i32
  }
  func.func @transform_5(%arg0: i32) -> (i32, i32, i32) {
    %c0_i32 = arith.constant 0 : i32
    %c0_i32_0 = arith.constant 0 : i32
    %c0_i32_1 = arith.constant 0 : i32
    return %arg0, %c0_i32, %c0_i32_0 : i32, i32, i32
  }
  func.func @transform_6(%arg0: i32) -> (i32, i32, i32) {
    %c0_i32 = arith.constant 0 : i32
    %c0_i32_0 = arith.constant 0 : i32
    %c0_i32_1 = arith.constant 0 : i32
    return %arg0, %c0_i32, %c0_i32_0 : i32, i32, i32
  }
}

</mosaic_0001>

<bundles_post_ra>
// kernel: tpu_custom_call.1
= control target key start
LH: loop header
LB: loop body
LE: loop exit
PB: predicated region body
PF: predicated region fallthrough
CT: control target
= control target key end

     0   :  { %12 = vsyncpa [#allocation3], 0  ;;  %s1283_s0 = inlined_call_operand.hbm [shape: f32[2,32,256], index: 0, kind: input, shape index: {}]   ;;  %s1284_s1 = inlined_call_operand.vmem [shape: f32[32,2], index: 1, kind: input, shape index: {}]   ;;  %s1285_s2 = inlined_call_operand.vmem [shape: f32[1,2], index: 2, kind: input, shape index: {}]   ;;  %s1286_s3 = inlined_call_operand.vmem [shape: f32[2,32], index: 3, kind: input, shape index: {}]   ;;  %s1287_s4 = inlined_call_operand.vmem [shape: f32[1,32], index: 4, kind: input, shape index: {}]   ;;  %s1288_s5 = inlined_call_operand.hbm [shape: f32[2,32,256], index: 5, kind: output, shape index: {0}]   ;;  %s1289_s6 = inlined_call_operand.hbm [shape: f32[2,1,32], index: 6, kind: output, shape index: {1}]  }
   0x1   :  { %14 = vsyncpa [#allocation3 + $0x1], 0 }
   0x2   :  { %15 = vsyncpa [#allocation4], 0 }
   0x3   :  { %17 = vsyncpa [#allocation4 + $0x1], 0 }
   0x4   :  { %18 = vsyncpa [#allocation7], 0 }
   0x5   :  { %20 = vsyncpa [#allocation7 + $0x1], 0  ;;  %s1022_s21 = smov 0   ;;  %s1024_s22 = smov 0  }
   0x6   :  { %s1026_s23 = smov 0   ;;  %s1028_s24 = smov 0  }
   0x7 LB: > { %s1043_s25 = sadd.s32 4294967295, %s975_s24   ;;  %s733_s26 = sadd.s32 4294967294, %s975_s24   ;;  %s975_s24 = sphi %s1028_s24, %s1302_s24   ;;  %s971_s23 = sphi %s1026_s23, %s1301_s23   ;;  %s967_s22 = sphi %s1024_s22, %s1300_s22   ;;  %s963_s21 = sphi %s1022_s21, %s1299_s21  }
   0x8   : > { %s1047_s27 = sadd.s32 1, %s975_s24   ;;  %s33_s28 = sadd.s32 1, %s971_s23 }
   0x9   : > { %s30_s29 = ssub.s32 %s975_s24, %s1047_s27  ;;  %p40_p0 = scmp.ne.s32.totalorder %s971_s23, %s967_s22 }
   0xa   : > { %p31_p1 = scmp.eq.s32.totalorder %s30_s29, 0  ;;  %p41_p2 = scmp.eq.s32.totalorder %s975_s24, 0 }
   0xb   : > { %p46_p3 = scmp.ne.s32.totalorder %s967_s22, %s963_s21  ;;  %p47_p4 = scmp.eq.s32.totalorder %s1043_s25, 0 }
   0xc   : > { %s1059_s30 = scalar_select %p31_p1, %s971_s23, %s33_s28  }
   0xd   : > { %p1061_p5 = por %p41_p2, %p40_p0  ;;  %p1065_p6 = por %p47_p4, %p46_p3 }
   0xe   : > { %p154_p7 = scmp.eq.s32.totalorder %s1043_s25, 1  ;;  %p160_p8 = scmp.eq.s32.totalorder %s733_s26, 1 }
   0xf   : > { %p802_p10 = scmp.lt.s32.totalorder %s975_s24, 2  ;;  %s218_s11 = sand.u32 1, %s971_s23  }
  0x10   : > { %p1072_p11 = por %p154_p7, %p40_p0  ;;  %p1076_p12 = por %p160_p8, %p46_p3 }
  0x11   : > { %s754_s12 = sshll.u32 %s975_s24, 10  ;;  %s736_s13 = sshll.u32 %s218_s11, 6 }
  0x12   : > { %s1293_s9 = scalar_select %p1072_p11, 1, 0 }
  0x13   : > { %s1294_s10 = scalar_select %p1076_p12, 1, 0 }
  0x14   : > { %s1085_s16 = scalar_lea.hbm %s1283_s0, %s754_s12  ;;  %s222_s17 = scalar_lea.vmem [#allocation2], %s736_s13 }
  0x15   : > { %s229_s18 = sshll.u32 %s222_s17, 4  ;;  %p1089_p13 = pnand %p802_p10, %p1061_p5  ;;  %s1093_s18 = int_to_ptr.vmem [resolvable:$true] %s229_s18 }
  0x16   : > { %s1095_s20 = scalar_lea.sflag [#allocation3], %s218_s11  ;;  %s847_s26 = scalar_lea.hbm %s1085_s16, 1024 }
  0x17   : > { %p848_p0 = scmp.ne.s32.totalorder %s1085_s16, %s847_s26  ;;  %p849_p1 = pneg %p1089_p13 }
  0x18   : > { %s852_s7 = scalar_lea.hbm %s1283_s0, 2048  ;;  %p853_p4 = scmp.lt.u32.totalorder %s1085_s16, %s1283_s0 }
  0x19   : > { %p850_p2 = pnand %p849_p1, %p848_p0  ;;  %p854_p5 = scmp.lt.u32.totalorder %s852_s7, %s847_s26 }
  0x1a   : > { %p856_p8 = scmp.lt.u32.totalorder %s847_s26, %s1085_s16 }
  0x1b   : > { %p851_p3 = pneg %p850_p2  ;;  %p855_p7 = por %p854_p5, %p853_p4 }
  0x1d   : > { %p857_p10 = por %p856_p8, %p855_p7 }
  0x1f   : > { %p858_p9 = pnand %p857_p10, %p851_p3 }
  0x21   : > { %861 = shalt.err (!%p858_p9)
}
  0x22   : > { %s862_s11 = scalar_lea.vmem %s1093_s18, 1024  ;;  %s977_s14 = smov [#allocation2]  }
  0x23   : > { %p863_p0 = scmp.ne.s32.totalorder %s1093_s18, %s862_s11  ;;  %s867_s15 = sshll.u32 %s977_s14, 4  ;;  %s868_s15 = int_to_ptr.vmem [resolvable:$false] %s867_s15 }
  0x24   : > { %s869_s17 = scalar_lea.vmem %s868_s15, 2048  ;;  %p870_p11 = scmp.lt.s32.totalorder %s1093_s18, %s868_s15 }
  0x25   : > { %p865_p2 = pnand %p863_p0, %p849_p1  ;;  %p871_p4 = scmp.lt.s32.totalorder %s869_s17, %s862_s11 }
  0x27   : > { %p866_p12 = pneg %p865_p2  ;;  %p872_p5 = por %p871_p4, %p870_p11 }
  0x29   : > { %p873_p7 = pnand %p872_p5, %p866_p12 }
  0x2b   : > { %876 = shalt.err (!%p873_p7)
}
  0x2c   : > { %s978_s26 = smov 256   ;;  %s979_s28 = smov 16  }
  0x2d   : > { %794 = dma.hbm_to_vmem [thread:$0]  (!%p1089_p13), %s1085_s16, 1024, %s1093_s18, %s1095_s20, %s978_s26, %s978_s26, %s979_s28  }
  0x2e   : > { %p739_p9 = scmp.ge.s32.totalorder %s975_s24, 1  ;;  %p237_p1 = scmp.lt.s32.totalorder %s975_s24, 3 }
  0x30   : > { %p238_p3 = pnand %p739_p9, %p237_p1 }
  0x31   : > { %s1126_s29 = sand.u32 (!%p238_p3), 1, %s967_s22  }
  0x32   : > { %241 = sbr.rel (%p238_p3) target bundleno = 832 (0x340), region = 40  ;;  %s740_s7 = sshll.u32 (!%p238_p3), %s1126_s29, 6 }
  0x33   : > { %s244_s12 = scalar_lea.sflag (!%p238_p3), [#allocation3], %s1126_s29  ;;  %s247_s13 = scalar_lea.vmem (!%p238_p3), [#allocation2], %s740_s7 }
  0x39   : > { %950 = dma.done.wait (%p1065_p6), %s244_s12, 1024  }
  0x3a   : > { %952 = vsyncadd (%p1065_p6), %s244_s12, 4294966272  ;;  %v1136_v0 = vld [vmem:[%s247_s13 + $0x20] sm:$0xff]  ;;  %v1138_v1 = vld [vmem:[%s247_s13 + $0x28] sm:$0xff]  ;;  %v980_v19 = vmov 0.0|0.0   ;;  %vm981_vm0 = vmmov 0   ;;  %v982_v23 = vmov 0.0   ;;  %v320_v24 = vlaneseq }
  0x3b   : > { %v1140_v2 = vld [vmem:[%s247_s13] sm:$0xff]  ;;  %v294_v3 = vadd.f32 %v1138_v1, %v1136_v0  ;;  %v1144_v4 = vld [vmem:[%s247_s13 + $0x8] sm:$0xff]  ;;  %v1146_v5 = vld [vmem:[%s247_s13 + $0x30] sm:$0xff]  ;;  %v310_v15 = vmax.f32 %v1136_v0, %v1138_v1  ;;  %779 = vmatprep.subr.bf16.mxu0 %v980_v19  ;;  %771 = vmatprep.mubr.msk.f32.mxu0 %vm981_vm0, %v982_v23  ;;  %vm331_vm1 = vcmask 130112   ;;  %vm338_vm2 = vcmask 195712   ;;  %s751_s16 = sshll.u32 %s1043_s25, 4 }
  0x3c   : > { %v1148_v6 = vld [vmem:[%s247_s13 + $0x38] sm:$0xff]  ;;  %v288_v7 = vadd.f32 %v1144_v4, %v1140_v2  ;;  %v1152_v8 = vld [vmem:[%s247_s13 + $0x10] sm:$0xff]  ;;  %v304_v13 = vmax.f32 %v1140_v2, %v1144_v4  ;;  %v374_v16 = vld [vmem:[%s1284_s1] sm:$0xff]  ;;  %774 = vmatprep.subr.mxu1 %v982_v23  ;;  %776 = vmatprep.mubr.msk.f32.mxu1 %vm981_vm0, %v982_v23  ;;  %v321_v25 = vand.u32 127, %v320_v24  ;;  %v1180_v28 = vshrl.u32 %v320_v24, 7  ;;  %s279_s18 = scalar_lea.vmem [#allocation6], %s1126_s29  ;;  %s1203_s11 = scalar_lea.hbm %s1289_s6, %s751_s16 }
  0x3d   : > { %v1154_v9 = vld [vmem:[%s247_s13 + $0x18] sm:$0xff]  ;;  %295 = vadd.xlane.f32.xlu1 %v294_v3  ;;  %v297_v10 = vadd.f32 %v1148_v6, %v1146_v5  ;;  %v313_v14 = vmax.f32 %v1146_v5, %v1148_v6  ;;  %v375_v17 = vld [vmem:[%s1284_s1 + $0x8] sm:$0xff]  ;;  %v376_v20 = vld [vmem:[%s1284_s1 + $0x10] sm:$0xff]  ;;  %vm345_vm3 = vcmask 261312   ;;  %vm372_vm4 = vcmask 1040384   ;;  %s635_s14 = sshll.u32 %s279_s18, 4  ;;  %s636_s14 = int_to_ptr.vmem [resolvable:$true] %s635_s14 }
  0x3e   : > { %289 = vadd.xlane.f32.xlu0 %v288_v7  ;;  %v291_v11 = vadd.f32 %v1154_v9, %v1152_v8  ;;  %v307_v12 = vmax.f32 %v1152_v8, %v1154_v9  ;;  %v780_v18 = vpack.c.bf16 %v375_v17, %v374_v16  ;;  %v377_v21 = vld [vmem:[%s1284_s1 + $0x18] sm:$0xff]  ;;  %v326_v27 = vadd.s32 4294967288, %v321_v25  ;;  %v378_v61 = vld [vmem:[%s1286_s3] sm:$0x3]  ;;  %s607_s15 = scalar_lea.sflag [#allocation7], %s1126_s29  ;;  %s877_s17 = scalar_lea.vmem %s636_s14, 16 }
  0x3f   : > { %v783_v22 = vpack.c.bf16 %v377_v21, %v376_v20  ;;  %v333_v30 = vadd.s32 4294967280, %v321_v25  ;;  %v324_v33 = vsub.s32 %v321_v25, %v1180_v28  ;;  %v340_v35 = vadd.s32 4294967272, %v321_v25  ;;  %v742_v62 = vld [vmem:[%s1285_s2] ss:$0 sm:$0xff]  ;;  %p878_p6 = scmp.ne.s32.totalorder %s636_s14, %s877_s17  ;;  %p1296_p11 = scmp.ne.s32.totalorder %s1293_s9, 0 }
  0x40   : > { %781 = vmatpush3.bf16.msra.mxu0 %v780_v18  ;;  %v329_v32 = vsub.s32 %v326_v27, %v1180_v28  ;;  %vm387_vm5 = vcmask 261120   ;;  %vm472_vm6 = vcmask 1041408   ;;  %vm468_vm7 = vcmask 15360   ;;  %s983_s26 = smov [#allocation6]  }
  0x41   : > { %298 = vadd.xlane.f32.xlu1 %v297_v10  ;;  %782 = vmatprep.subr.bf16.mxu0 %v980_v19  ;;  %v336_v38 = vsub.s32 %v333_v30, %v1180_v28  ;;  %v343_v43 = vsub.s32 %v340_v35, %v1180_v28  ;;  %v568_v20 = vsub.s32 0, %v1180_v28  ;;  %vm556_vm8 = vcmask 253952   ;;  %p879_p12 = pnand %p878_p6, %p1296_p11  ;;  %s881_s28 = sshll.u32 %s983_s26, 4  ;;  %s882_s28 = int_to_ptr.vmem [resolvable:$false] %s881_s28 }
  0x42   : > { %292 = vadd.xlane.f32.xlu0 %v291_v11  ;;  %775 = vmatpush3.msk.msra.mxu1 %vm472_vm6, %v378_v61  ;;  %v744_v11 = vld [vmem:[%s1287_s4] ss:$0 sm:$0xff]  ;;  %s883_s12 = scalar_lea.vmem %s882_s28, 32  ;;  %p884_p8 = scmp.lt.s32.totalorder %s636_s14, %s882_s28 }
  0x43   : > { %p880_p13 = pneg %p879_p12  ;;  %p885_p10 = scmp.lt.s32.totalorder %s883_s12, %s877_s17 }
  0x44   : > { %784 = vmatpush3.bf16.msra.mxu0 %v783_v22 }
  0x45   : > { %308 = vmax.xlane.f32.xlu1 %v307_v12  ;;  %p886_p0 = por %p885_p10, %p884_p8 }
  0x46   : > { %305 = vmax.xlane.f32.xlu0 %v304_v13 }
  0x47   : > { %p887_p2 = pnand %p886_p0, %p880_p13 }
  0x49   : > { %314 = vmax.xlane.f32.xlu1 %v313_v14 }
  0x4a   : > { %311 = vmax.xlane.f32.xlu0 %v310_v15 }
  0xca   : > { %v296_v26 = vpop.xlane.xlu1 %295 }
  0xcb   : > { %v290_v29 = vpop.xlane.xlu0 %289  ;;  %v302_v39 = vmul.f32 0.00390625, %v296_v26 }
  0xcc   : > { %v300_v34 = vmul.f32 0.00390625, %v290_v29 }
  0xcd   : > { %v337_v49 = vrot.slane %v302_v39, %v336_v38 }
  0xce   : > { %v299_v31 = vpop.xlane.xlu1 %298  ;;  %v325_v42 = vrot.slane %v300_v34, %v324_v33 }
  0xcf   : > { %v293_v36 = vpop.xlane.xlu0 %292  ;;  %v303_v44 = vmul.f32 0.00390625, %v299_v31 }
  0xd0   : > { %v301_v37 = vmul.f32 0.00390625, %v293_v36 }
  0xd1   : > { %v344_v51 = vrot.slane %v303_v44, %v343_v43 }
  0xd2   : > { %v330_v40 = vrot.slane %v301_v37, %v329_v32  ;;  %v309_v41 = vpop.xlane.xlu1 %308 }
  0xd3   : > { %v306_v45 = vpop.xlane.xlu0 %305  ;;  %v359_v47 = vrot.slane %v309_v41, %v329_v32 }
  0xd4   : > { %v332_v46 = vsel %vm331_vm1, %v330_v40, %v325_v42  ;;  %v355_v48 = vrot.slane %v306_v45, %v324_v33 }
  0xd5   : > { %v339_v55 = vsel %vm338_vm2, %v337_v49, %v332_v46 }
  0xd6   : > { %v315_v50 = vpop.xlane.xlu1 %314  ;;  %v360_v56 = vsel %vm331_vm1, %v359_v47, %v355_v48  ;;  %v346_v59 = vsel %vm345_vm3, %v344_v51, %v339_v55 }
  0xd7   : > { %v312_v52 = vpop.xlane.xlu0 %311  ;;  %v369_v53 = vrot.slane %v315_v50, %v343_v43 }
  0xd8   : > { %v364_v54 = vrot.slane %v312_v52, %v336_v38 }
  0xda   : > { %v365_v57 = vsel %vm338_vm2, %v364_v54, %v360_v56 }
  0xdb   : > { %v370_v58 = vsel %vm345_vm3, %v369_v53, %v365_v57 }
  0xdc   : > { %v373_v60 = vsel %vm372_vm4, %v346_v59, %v370_v58 }
  0xdd   : > { %772 = vmatmul.mubr.msk.f32.vlgmr.msra.gmra.mrb[0].mxu0 %vm387_vm5, %v373_v60 }
 0x1b0   : > { %v457_v63 = vpop.f32.mrb[0].mxu0 }
 0x1b1   : > { %v458_v3 = vadd.f32 %v742_v62, %v457_v63  ;;  %v773_v7 = vpop.f32.mrb[1].mxu0 }
 0x1b3   : > { %v461_v10 = vmax.f32 %v458_v3, 0.0 }
 0x1b5   : > { %777 = vmatmul.mubr.msk.f32.vlgmr.msra.gmra.mrb[0].mxu1 %vm468_vm7, %v461_v10 }
 0x288   : > { %v542_v12 = vpop.f32.mrb[0].mxu1 }
 0x289   : > { %v543_v13 = vadd.f32 %v744_v11, %v542_v12  ;;  %v778_v14 = vpop.f32.mrb[1].mxu1 }
 0x28b   : > { %v747_v15 = vmul.f32 -1.442695, %v543_v13 }
 0x28d   : > { %843 = vpow2.f32 %v747_v15 }
 0x297   : > { %v844_v16 = vpop.eup %843 }
 0x298   : > { %v549_v17 = vadd.f32 1.0, %v844_v16 }
 0x29a   : > { %845 = vrcp.f32 %v549_v17 }
 0x2a4   : > { %v846_v18 = vpop.eup %845 }
 0x2a5   : > { %v553_v19 = vrot.slane %v846_v18, 1 }
 0x2a7   : > { %v555_v21 = vadd.f32 %v846_v18, %v553_v19 }
 0x2a9   : > { %v569_v22 = vrot.slane %v555_v21, %v568_v20  ;;  %557 = vst.msk [vmem:[%s279_s18] sm:$0x1] %vm556_vm8, %v555_v21 }
 0x2ab   : > { %575 = vbcast.lane.b32.xlu1 %v569_v22, 264  ;;  %571 = vbcast.lane.b32.xlu0 %v569_v22, 256 }
 0x2ac   : > { %890 = shalt.err (!%p887_p2)
}
 0x2ad   : > { %s891_s13 = scalar_lea.hbm %s1203_s11, 16  ;;  %s895_s18 = scalar_lea.hbm %s1289_s6, 32 }
 0x2ae   : > { %p892_p4 = scmp.ne.s32.totalorder %s1203_s11, %s891_s13  ;;  %p896_p9 = scmp.lt.u32.totalorder %s1203_s11, %s1289_s6 }
 0x2af   : > { %p897_p1 = scmp.lt.u32.totalorder %s895_s18, %s891_s13  ;;  %p899_p6 = scmp.lt.u32.totalorder %s891_s13, %s1203_s11 }
 0x2b0   : > { %p893_p5 = pnand %p892_p4, %p1296_p11 }
 0x2b1   : > { %p898_p3 = por %p897_p1, %p896_p9 }
 0x2b2   : > { %p894_p7 = pneg %p893_p5 }
 0x2b3   : > { %p900_p12 = por %p899_p6, %p898_p3 }
 0x2b5   : > { %p901_p13 = pnand %p900_p12, %p894_p7 }
 0x2b7   : > { %904 = shalt.err (!%p901_p13)
}
 0x2b8   : > { %788 = dma.vmem_to_hbm [thread:$0]  (%p1296_p11), %s636_s14, 16, %s1203_s11, %s607_s15   ;;  %579 = vbcast.lane.b32.xlu1 %v569_v22, 272 }
 0x2b9   : > { %s273_s17 = scalar_lea.vmem [#allocation5], %s740_s7  ;;  %s755_s14 = sshll.u32 %s1043_s25, 10 }
 0x2ba   : > { %s619_s11 = sshll.u32 %s273_s17, 4  ;;  %s1237_s26 = scalar_lea.hbm %s1288_s5, %s755_s14  ;;  %s1232_s11 = int_to_ptr.vmem [resolvable:$true] %s619_s11 }
 0x2bb   : > { %s602_s25 = scalar_lea.sflag [#allocation4], %s1126_s29  ;;  %s905_s28 = scalar_lea.vmem %s1232_s11, 1024 }
 0x2bc   : > { %583 = vbcast.lane.b32.xlu1 %v569_v22, 280  ;;  %p906_p8 = scmp.ne.s32.totalorder %s1232_s11, %s905_s28  ;;  %s984_s12 = smov [#allocation5]  }
 0x2bd   : > { %s909_s13 = sshll.u32 %s984_s12, 4  ;;  %s910_s13 = int_to_ptr.vmem [resolvable:$false] %s909_s13 }
 0x2be   : > { %p907_p10 = pnand %p906_p8, %p1296_p11  ;;  %s911_s8 = scalar_lea.vmem %s910_s13, 2048 }
 0x2bf   : > { %p912_p2 = scmp.lt.s32.totalorder %s1232_s11, %s910_s13  ;;  %p913_p4 = scmp.lt.s32.totalorder %s911_s8, %s905_s28 }
 0x2c0   : > { %p908_p0 = pneg %p907_p10 }
 0x2c1   : > { %p914_p5 = por %p913_p4, %p912_p2 }
 0x2c3   : > { %p915_p7 = pnand %p914_p5, %p908_p0 }
 0x31d   : > { %v576_v23 = vpop.permute.xlu1 %575  ;;  %v572_v24 = vpop.permute.xlu0 %571 }
 0x31e   : > { %v587_v25 = vmul.f32 %v576_v23, %v1152_v8  ;;  %v588_v26 = vmul.f32 %v576_v23, %v1154_v9  ;;  %v585_v27 = vmul.f32 %v572_v24, %v1140_v2  ;;  %v586_v28 = vmul.f32 %v572_v24, %v1144_v4 }
 0x320   : > { %595 = vst [vmem:[%s273_s17 + $0x10] sm:$0xff] %v587_v25  ;;  %596 = vst [vmem:[%s273_s17 + $0x18] sm:$0xff] %v588_v26 }
 0x321   : > { %593 = vst [vmem:[%s273_s17] sm:$0xff] %v585_v27  ;;  %594 = vst [vmem:[%s273_s17 + $0x8] sm:$0xff] %v586_v28 }
 0x32a   : > { %v580_v29 = vpop.permute.xlu1 %579 }
 0x32b   : > { %v589_v30 = vmul.f32 %v580_v29, %v1136_v0  ;;  %v590_v8 = vmul.f32 %v580_v29, %v1138_v1 }
 0x32d   : > { %597 = vst [vmem:[%s273_s17 + $0x20] sm:$0xff] %v589_v30  ;;  %598 = vst [vmem:[%s273_s17 + $0x28] sm:$0xff] %v590_v8 }
 0x32e   : > { %v584_v2 = vpop.permute.xlu1 %583 }
 0x32f   : > { %v591_v4 = vmul.f32 %v584_v2, %v1146_v5  ;;  %v592_v0 = vmul.f32 %v584_v2, %v1148_v6 }
 0x331   : > { %599 = vst [vmem:[%s273_s17 + $0x30] sm:$0xff] %v591_v4  ;;  %600 = vst [vmem:[%s273_s17 + $0x38] sm:$0xff] %v592_v0 }
 0x332   : > { %918 = shalt.err (!%p915_p7)
}
 0x333   : > { %s919_s16 = scalar_lea.hbm %s1237_s26, 1024  ;;  %s923_s20 = scalar_lea.hbm %s1288_s5, 2048 }
 0x334   : > { %p920_p9 = scmp.ne.s32.totalorder %s1237_s26, %s919_s16  ;;  %p924_p6 = scmp.lt.u32.totalorder %s1237_s26, %s1288_s5 }
 0x335   : > { %p925_p12 = scmp.lt.u32.totalorder %s923_s20, %s919_s16  ;;  %p927_p8 = scmp.lt.u32.totalorder %s919_s16, %s1237_s26 }
 0x336   : > { %p921_p1 = pnand %p920_p9, %p1296_p11 }
 0x337   : > { %p926_p13 = por %p925_p12, %p924_p6 }
 0x338   : > { %p922_p3 = pneg %p921_p1 }
 0x339   : > { %p928_p10 = por %p927_p8, %p926_p13 }
 0x33b   : > { %p929_p0 = pnand %p928_p10, %p922_p3 }
 0x33d   : > { %932 = shalt.err (!%p929_p0)
}
 0x33e   : > { %s985_s7 = smov 256   ;;  %s986_s15 = smov 16  }
 0x33f   : > { %787 = dma.vmem_to_hbm [thread:$0]  (%p1296_p11), %s1232_s11, 1024, %s1237_s26, %s602_s25, %s985_s7, %s985_s7, %s986_s15  }
 0x340 PF: > { %s647_s28 = sand.u32 1, %s963_s21   ;;  %p1297_p2 = scmp.ne.s32.totalorder %s1294_s10, 0 }
 0x341   : > { %p1298_p4 = scmp.ge.s32.totalorder %s975_s24, 2  ;;  %s648_s12 = scalar_lea.sflag [#allocation4], %s647_s28 }
 0x343   : > { %p796_p5 = pnand %p1298_p4, %p1297_p2 }
 0x345   : > { %954 = dma.done.wait (!%p796_p5), %s648_s12, 1024  }
 0x346   : > { %956 = vsyncadd (!%p796_p5), %s648_s12, 4294966272  ;;  %s657_s13 = scalar_lea.sflag [#allocation7], %s647_s28 }
 0x347   : > { %958 = dma.done.wait (!%p796_p5), %s657_s13, 16  }
 0x348   : > { %960 = vsyncadd (!%p796_p5), %s657_s13, 4294967280  ;;  %p23_p11 = scmp.ge.s32.totalorder %s1047_s27, 4   ;;  %s1299_s21 = smov %s967_s22 }
 0x349   : > { %s1300_s22 = smov %s971_s23  ;;  %s1301_s23 = smov %s1059_s30 }
 0x34a   : > { %s1302_s24 = smov %s1047_s27  ;;  %25 = sbr.rel (!%p23_p11) target bundleno = 7 (0x7), region = 102 }
 0x351   :  { %661 = vsyncpa [#allocation3], 1 }
 0x352   :  { %663 = vsyncpa [#allocation3 + $0x1], 1 }
 0x353   :  { %664 = vsyncpa [#allocation4], 1 }
 0x354   :  { %666 = vsyncpa [#allocation4 + $0x1], 1 }
 0x355   :  { %667 = vsyncpa [#allocation7], 1 }
 0x356   :  { %669 = vsyncpa [#allocation7 + $0x1], 1 }

</bundles_post_ra>
